<compile_context>
chip_gen: v7x
topology: tpu7x:2x2x1
jax: 0.10.0
libtpu: 0.0.40
codegen_flags: <defaults>
</compile_context>

<pallas_src>
import jax
import jax.numpy as jnp
from jax.experimental import pallas as pl
from jax.experimental.pallas import tpu as pltpu


# ----------------------------------------------------------------------------
# Pallas kernel: full WarmTagger forward in one VMEM-resident pass
# ----------------------------------------------------------------------------
def _warm_tagger_kernel(ids_ref, wx_ref, b_ref, w_hh_ref, w_out_ref, b_out_ref,
                        o_ref, hs_ref):
    L, T = o_ref.shape            # sequence length, tagset size
    V = wx_ref.shape[0]           # vocab size
    H = w_hh_ref.shape[0]         # hidden dim (4H == 128 -> one lane vreg)

    # 1) Folded embedding + input projection for ALL timesteps in one matmul:
    #    gx = onehot(ids) @ (emb @ w_ih) + b  -> [L, 4H]  (f32 accumulation).
    ids = ids_ref[...]                                            # [L, 1] int32
    col = jax.lax.broadcasted_iota(jnp.int32, (L, V), 1)          # [L, V]
    onehot = (col == ids).astype(jnp.bfloat16)                    # exact 0/1
    gx = jnp.dot(onehot, wx_ref[...],
                 preferred_element_type=jnp.float32) + b_ref[...]  # [L, 4H] f32

    # Lane mask for the 'g' (tanh) gate group — hoisted out of the time loop.
    lane = jax.lax.broadcasted_iota(jnp.int32, (1, 4 * H), 1)
    g_mask = (lane >= 2 * H) & (lane < 3 * H)                     # [1, 4H]

    # 2) Sequential LSTM recurrence (gate order i, f, g, o — torch.nn.LSTM).
    w_hh = w_hh_ref[...]                                          # [H, 4H] bf16
    h = jnp.zeros((1, H), jnp.float32)
    c = jnp.zeros((1, H), jnp.float32)
    for t in range(L):                                            # L tiny & static
        gates = gx[t:t + 1, :] + jnp.dot(h.astype(jnp.bfloat16), w_hh,
                                         preferred_element_type=jnp.float32)
        # Single full-vreg EUP call per step: tanh(x) = 2*sigmoid(2x) - 1.
        pre = jnp.where(g_mask, gates + gates, gates)
        s = jax.nn.sigmoid(pre)                                   # one [1,128] EUP op
        act = jnp.where(g_mask, s + s - 1.0, s)                   # cheap VPU fixup
        i = act[:, 0:H]
        f = act[:, H:2 * H]
        g = act[:, 2 * H:3 * H]
        o = act[:, 3 * H:4 * H]
        c = f * c + i * g
        h = o * jnp.tanh(c)
        hs_ref[pl.ds(t, 1), :] = h                                # row store -> scratch

    # 3) Tag projection + row-wise log-softmax over the tag dim.
    hout = hs_ref[...].astype(jnp.bfloat16)                       # [L, H]
    logits = jnp.dot(hout, w_out_ref[...],
                     preferred_element_type=jnp.float32) + b_out_ref[...]  # [L, T]
    m = jnp.max(logits, axis=-1, keepdims=True)
    z = logits - m
    lse = jnp.log(jnp.sum(jnp.exp(z), axis=-1, keepdims=True))
    o_ref[...] = (z - lse).astype(o_ref.dtype)


def _full_vmem(shape):
    """Whole-array VMEM block (no grid)."""
    return pl.BlockSpec(shape, lambda: (0,) * len(shape))


@jax.jit
def warm_tagger_forward(x, kp):
    """x: int token ids [L]  ->  log-probs [L, tagset_size]."""
    L = x.shape[0]
    H = kp["w_hh"].shape[0]
    T = kp["w_out"].shape[1]
    ids2d = x.reshape(L, 1).astype(jnp.int32)   # metadata-only reshape under jit

    return pl.pallas_call(
        _warm_tagger_kernel,
        out_shape=jax.ShapeDtypeStruct((L, T), jnp.float32),
        in_specs=[
            _full_vmem(ids2d.shape),
            _full_vmem(kp["wx"].shape),
            _full_vmem(kp["b"].shape),
            _full_vmem(kp["w_hh"].shape),
            _full_vmem(kp["w_out"].shape),
            _full_vmem(kp["b_out"].shape),
        ],
        out_specs=_full_vmem((L, T)),
        scratch_shapes=[pltpu.VMEM((L, H), jnp.float32)],         # per-step h rows
    )(ids2d, kp["wx"], kp["b"], kp["w_hh"], kp["w_out"], kp["b_out"])


# ----------------------------------------------------------------------------
# Module wrapper (JAX equivalent of the PyTorch WarmTagger nn.Module)
# ----------------------------------------------------------------------------
class WarmTagger:
    def __init__(self, embedding_dim, hidden_dim, vocab_size, tagset_size, key):
        self.arg = (embedding_dim, hidden_dim, vocab_size, tagset_size)
        # warm.up() lazily shape-infers + initializes torch params; here we
        # initialize equivalent JAX params directly (random, small scale).
        k = jax.random.split(key, 6)
        s = 0.1
        self.params = {
            "emb":   jax.random.normal(k[0], (vocab_size, embedding_dim), jnp.float32) * s,
            "w_ih":  jax.random.normal(k[1], (embedding_dim, 4 * hidden_dim), jnp.float32) * s,
            "w_hh":  jax.random.normal(k[2], (hidden_dim, 4 * hidden_dim), jnp.float32) * s,
            "b":     jax.random.normal(k[3], (1, 4 * hidden_dim), jnp.float32) * s,
            "w_out": jax.random.normal(k[4], (hidden_dim, tagset_size), jnp.float32) * s,
            "b_out": jax.random.normal(k[5], (1, tagset_size), jnp.float32) * s,
        }
        # Kernel-ready parameters: embedding folded into the input projection
        # (exact linear fold, done once in f32), MXU operands pre-cast to bf16.
        self.kernel_params = {
            "wx":    (self.params["emb"] @ self.params["w_ih"]).astype(jnp.bfloat16),
            "b":     self.params["b"],
            "w_hh":  self.params["w_hh"].astype(jnp.bfloat16),
            "w_out": self.params["w_out"].astype(jnp.bfloat16),
            "b_out": self.params["b_out"],
        }

    def forward(self, x):
        return warm_tagger_forward(x, self.kernel_params)

    __call__ = forward


# ----------------------------------------------------------------------------
# Pure-JAX f32 reference (same parameterization) for correctness check
# ----------------------------------------------------------------------------
def warm_tagger_reference(x, params):
    emb = params["emb"][x]                                   # [L, E]
    w_ih, w_hh, b = params["w_ih"], params["w_hh"], params["b"][0]
    H = w_hh.shape[0]

    def step(carry, x_t):
        h, c = carry
        gates = x_t @ w_ih + h @ w_hh + b
        i = jax.nn.sigmoid(gates[0:H])
        f = jax.nn.sigmoid(gates[H:2 * H])
        g = jnp.tanh(gates[2 * H:3 * H])
        o = jax.nn.sigmoid(gates[3 * H:4 * H])
        c = f * c + i * g
        h = o * jnp.tanh(c)
        return (h, c), h

    init = (jnp.zeros(H, jnp.float32), jnp.zeros(H, jnp.float32))
    _, hs = jax.lax.scan(step, init, emb)                    # [L, H]
    logits = hs @ params["w_out"] + params["b_out"][0]       # [L, T]
    return jax.nn.log_softmax(logits, axis=-1)


if __name__ == "__main__":
    embedding_dim, hidden_dim, vocab_size, tagset_size = 32, 32, 16, 8
    seq_len = 8

    key = jax.random.PRNGKey(0)
    k_mod, k_x = jax.random.split(key)
    module = WarmTagger(embedding_dim, hidden_dim, vocab_size, tagset_size, k_mod)
    x = jax.random.randint(k_x, (seq_len,), 0, vocab_size, dtype=jnp.int32)

    y = module(x)
    y = jax.block_until_ready(y)

    ref = warm_tagger_reference(x, module.params)
    assert y.shape == (seq_len, tagset_size) and y.dtype == jnp.float32
    # Tolerance covers bf16 MXU operands + tanh-via-sigmoid rewrite (real bugs
    # such as swapped gates produce errors orders of magnitude larger).
    assert jnp.allclose(y, ref, atol=2e-2, rtol=2e-2), "mismatch vs reference"

    print("KERNEL_OK")
</pallas_src>

<mosaic_0001>
module attributes {stable_mosaic.version = 11 : i64} {
  func.func @_warm_tagger_kernel(%arg0: memref<8x1xi32, #tpu.memory_space<vmem>>, %arg1: memref<16x128xbf16, #tpu.memory_space<vmem>>, %arg2: memref<1x128xf32, #tpu.memory_space<vmem>>, %arg3: memref<32x128xbf16, #tpu.memory_space<vmem>>, %arg4: memref<32x8xbf16, #tpu.memory_space<vmem>>, %arg5: memref<1x8xf32, #tpu.memory_space<vmem>>, %arg6: memref<8x8xf32, #tpu.memory_space<vmem>>, %arg7: memref<8x32xf32, #tpu.memory_space<vmem>>) attributes {dimension_semantics = [], scalar_prefetch = 0 : i64, scratch_operands = 1 : i64, tpu.core_type = #tpu.core_type<tc>} {
    %c0 = arith.constant 0 : index
    %c0_0 = arith.constant 0 : index
    %0 = vector.load %arg0[%c0, %c0_0] : memref<8x1xi32, #tpu.memory_space<vmem>>, vector<8x1xi32>
    %1 = tpu.iota {dimensions = array<i32: 1>} : vector<8x16xi32>
    %2 = vector.broadcast %0 : vector<8x1xi32> to vector<8x16xi32>
    %3 = arith.cmpi eq, %1, %2 : vector<8x16xi32>
    %4 = arith.extui %3 : vector<8x16xi1> to vector<8x16xi32>
    %5 = arith.sitofp %4 : vector<8x16xi32> to vector<8x16xf32>
    %6 = arith.truncf %5 : vector<8x16xf32> to vector<8x16xbf16>
    %c0_1 = arith.constant 0 : index
    %c0_2 = arith.constant 0 : index
    %7 = vector.load %arg1[%c0_1, %c0_2] : memref<16x128xbf16, #tpu.memory_space<vmem>>, vector<16x128xbf16>
    %cst = arith.constant dense<0.000000e+00> : vector<8x128xf32>
    %8 = tpu.matmul %6, %7, %cst {dimension_numbers = #tpu.dot_dimension_numbers<[1], [0], [0], [1], [0, 0, 1, 1], [], []>} : vector<8x16xbf16>, vector<16x128xbf16>, vector<8x128xf32> -> vector<8x128xf32>
    %c0_3 = arith.constant 0 : index
    %c0_4 = arith.constant 0 : index
    %9 = vector.load %arg2[%c0_3, %c0_4] : memref<1x128xf32, #tpu.memory_space<vmem>>, vector<1x128xf32>
    %10 = vector.broadcast %9 : vector<1x128xf32> to vector<8x128xf32>
    %11 = arith.addf %8, %10 : vector<8x128xf32>
    %12 = tpu.iota {dimensions = array<i32: 1>} : vector<1x128xi32>
    %c64_i32 = arith.constant 64 : i32
    %13 = vector.broadcast %c64_i32 : i32 to vector<1x128xi32>
    %14 = arith.cmpi sge, %12, %13 : vector<1x128xi32>
    %c96_i32 = arith.constant 96 : i32
    %15 = vector.broadcast %c96_i32 : i32 to vector<1x128xi32>
    %16 = arith.cmpi slt, %12, %15 : vector<1x128xi32>
    %17 = arith.andi %14, %16 : vector<1x128xi1>
    %c0_5 = arith.constant 0 : index
    %c0_6 = arith.constant 0 : index
    %18 = vector.load %arg3[%c0_5, %c0_6] : memref<32x128xbf16, #tpu.memory_space<vmem>>, vector<32x128xbf16>
    %cst_7 = arith.constant 0.000000e+00 : f32
    %19 = vector.broadcast %cst_7 : f32 to vector<1x32xf32>
    %cst_8 = arith.constant 0.000000e+00 : f32
    %20 = vector.broadcast %cst_8 : f32 to vector<1x32xf32>
    %21 = vector.extract_strided_slice %11 {offsets = [0, 0], sizes = [1, 128], strides = [1, 1]} : vector<8x128xf32> to vector<1x128xf32>
    %22 = arith.truncf %19 : vector<1x32xf32> to vector<1x32xbf16>
    %cst_9 = arith.constant dense<0.000000e+00> : vector<1x128xf32>
    %23 = tpu.matmul %22, %18, %cst_9 {dimension_numbers = #tpu.dot_dimension_numbers<[1], [0], [0], [1], [0, 0, 1, 1], [], []>} : vector<1x32xbf16>, vector<32x128xbf16>, vector<1x128xf32> -> vector<1x128xf32>
    %24 = arith.addf %21, %23 : vector<1x128xf32>
    %25 = arith.addf %24, %24 : vector<1x128xf32>
    %26 = arith.select %17, %25, %24 : vector<1x128xi1>, vector<1x128xf32>
    %27 = arith.negf %26 : vector<1x128xf32>
    %28 = math.exp %27 : vector<1x128xf32>
    %cst_10 = arith.constant 1.000000e+00 : f32
    %29 = vector.broadcast %cst_10 : f32 to vector<1x128xf32>
    %30 = arith.addf %29, %28 : vector<1x128xf32>
    %31 = arith.divf %29, %30 : vector<1x128xf32>
    %32 = arith.addf %31, %31 : vector<1x128xf32>
    %cst_11 = arith.constant 1.000000e+00 : f32
    %33 = vector.broadcast %cst_11 : f32 to vector<1x128xf32>
    %34 = arith.subf %32, %33 : vector<1x128xf32>
    %35 = arith.select %17, %34, %31 : vector<1x128xi1>, vector<1x128xf32>
    %36 = vector.extract_strided_slice %35 {offsets = [0, 0], sizes = [1, 32], strides = [1, 1]} : vector<1x128xf32> to vector<1x32xf32>
    %37 = vector.extract_strided_slice %35 {offsets = [0, 32], sizes = [1, 32], strides = [1, 1]} : vector<1x128xf32> to vector<1x32xf32>
    %38 = vector.extract_strided_slice %35 {offsets = [0, 64], sizes = [1, 32], strides = [1, 1]} : vector<1x128xf32> to vector<1x32xf32>
    %39 = vector.extract_strided_slice %35 {offsets = [0, 96], sizes = [1, 32], strides = [1, 1]} : vector<1x128xf32> to vector<1x32xf32>
    %40 = arith.mulf %37, %20 : vector<1x32xf32>
    %41 = arith.mulf %36, %38 : vector<1x32xf32>
    %42 = arith.addf %40, %41 : vector<1x32xf32>
    %43 = math.tanh %42 : vector<1x32xf32>
    %44 = arith.mulf %39, %43 : vector<1x32xf32>
    %c0_12 = arith.constant 0 : index
    %c0_13 = arith.constant 0 : index
    %45 = vector.load %arg7[%c0_12, %c0_13] : memref<8x32xf32, #tpu.memory_space<vmem>>, vector<1x32xf32>
    tpu.vector_store %arg7[%c0_12, %c0_13], %44 {strides = array<i32>} : memref<8x32xf32, #tpu.memory_space<vmem>>, vector<1x32xf32>,
    %46 = vector.extract_strided_slice %11 {offsets = [1, 0], sizes = [1, 128], strides = [1, 1]} : vector<8x128xf32> to vector<1x128xf32>
    %47 = arith.truncf %44 : vector<1x32xf32> to vector<1x32xbf16>
    %cst_14 = arith.constant dense<0.000000e+00> : vector<1x128xf32>
    %48 = tpu.matmul %47, %18, %cst_14 {dimension_numbers = #tpu.dot_dimension_numbers<[1], [0], [0], [1], [0, 0, 1, 1], [], []>} : vector<1x32xbf16>, vector<32x128xbf16>, vector<1x128xf32> -> vector<1x128xf32>
    %49 = arith.addf %46, %48 : vector<1x128xf32>
    %50 = arith.addf %49, %49 : vector<1x128xf32>
    %51 = arith.select %17, %50, %49 : vector<1x128xi1>, vector<1x128xf32>
    %52 = arith.negf %51 : vector<1x128xf32>
    %53 = math.exp %52 : vector<1x128xf32>
    %cst_15 = arith.constant 1.000000e+00 : f32
    %54 = vector.broadcast %cst_15 : f32 to vector<1x128xf32>
    %55 = arith.addf %54, %53 : vector<1x128xf32>
    %56 = arith.divf %54, %55 : vector<1x128xf32>
    %57 = arith.addf %56, %56 : vector<1x128xf32>
    %cst_16 = arith.constant 1.000000e+00 : f32
    %58 = vector.broadcast %cst_16 : f32 to vector<1x128xf32>
    %59 = arith.subf %57, %58 : vector<1x128xf32>
    %60 = arith.select %17, %59, %56 : vector<1x128xi1>, vector<1x128xf32>
    %61 = vector.extract_strided_slice %60 {offsets = [0, 0], sizes = [1, 32], strides = [1, 1]} : vector<1x128xf32> to vector<1x32xf32>
    %62 = vector.extract_strided_slice %60 {offsets = [0, 32], sizes = [1, 32], strides = [1, 1]} : vector<1x128xf32> to vector<1x32xf32>
    %63 = vector.extract_strided_slice %60 {offsets = [0, 64], sizes = [1, 32], strides = [1, 1]} : vector<1x128xf32> to vector<1x32xf32>
    %64 = vector.extract_strided_slice %60 {offsets = [0, 96], sizes = [1, 32], strides = [1, 1]} : vector<1x128xf32> to vector<1x32xf32>
    %65 = arith.mulf %62, %42 : vector<1x32xf32>
    %66 = arith.mulf %61, %63 : vector<1x32xf32>
    %67 = arith.addf %65, %66 : vector<1x32xf32>
    %68 = math.tanh %67 : vector<1x32xf32>
    %69 = arith.mulf %64, %68 : vector<1x32xf32>
    %c1 = arith.constant 1 : index
    %c0_17 = arith.constant 0 : index
    %70 = vector.load %arg7[%c1, %c0_17] : memref<8x32xf32, #tpu.memory_space<vmem>>, vector<1x32xf32>
    tpu.vector_store %arg7[%c1, %c0_17], %69 {strides = array<i32>} : memref<8x32xf32, #tpu.memory_space<vmem>>, vector<1x32xf32>,
    %71 = vector.extract_strided_slice %11 {offsets = [2, 0], sizes = [1, 128], strides = [1, 1]} : vector<8x128xf32> to vector<1x128xf32>
    %72 = arith.truncf %69 : vector<1x32xf32> to vector<1x32xbf16>
    %cst_18 = arith.constant dense<0.000000e+00> : vector<1x128xf32>
    %73 = tpu.matmul %72, %18, %cst_18 {dimension_numbers = #tpu.dot_dimension_numbers<[1], [0], [0], [1], [0, 0, 1, 1], [], []>} : vector<1x32xbf16>, vector<32x128xbf16>, vector<1x128xf32> -> vector<1x128xf32>
    %74 = arith.addf %71, %73 : vector<1x128xf32>
    %75 = arith.addf %74, %74 : vector<1x128xf32>
    %76 = arith.select %17, %75, %74 : vector<1x128xi1>, vector<1x128xf32>
    %77 = arith.negf %76 : vector<1x128xf32>
    %78 = math.exp %77 : vector<1x128xf32>
    %cst_19 = arith.constant 1.000000e+00 : f32
    %79 = vector.broadcast %cst_19 : f32 to vector<1x128xf32>
    %80 = arith.addf %79, %78 : vector<1x128xf32>
    %81 = arith.divf %79, %80 : vector<1x128xf32>
    %82 = arith.addf %81, %81 : vector<1x128xf32>
    %cst_20 = arith.constant 1.000000e+00 : f32
    %83 = vector.broadcast %cst_20 : f32 to vector<1x128xf32>
    %84 = arith.subf %82, %83 : vector<1x128xf32>
    %85 = arith.select %17, %84, %81 : vector<1x128xi1>, vector<1x128xf32>
    %86 = vector.extract_strided_slice %85 {offsets = [0, 0], sizes = [1, 32], strides = [1, 1]} : vector<1x128xf32> to vector<1x32xf32>
    %87 = vector.extract_strided_slice %85 {offsets = [0, 32], sizes = [1, 32], strides = [1, 1]} : vector<1x128xf32> to vector<1x32xf32>
    %88 = vector.extract_strided_slice %85 {offsets = [0, 64], sizes = [1, 32], strides = [1, 1]} : vector<1x128xf32> to vector<1x32xf32>
    %89 = vector.extract_strided_slice %85 {offsets = [0, 96], sizes = [1, 32], strides = [1, 1]} : vector<1x128xf32> to vector<1x32xf32>
    %90 = arith.mulf %87, %67 : vector<1x32xf32>
    %91 = arith.mulf %86, %88 : vector<1x32xf32>
    %92 = arith.addf %90, %91 : vector<1x32xf32>
    %93 = math.tanh %92 : vector<1x32xf32>
    %94 = arith.mulf %89, %93 : vector<1x32xf32>
    %c2 = arith.constant 2 : index
    %c0_21 = arith.constant 0 : index
    %95 = vector.load %arg7[%c2, %c0_21] : memref<8x32xf32, #tpu.memory_space<vmem>>, vector<1x32xf32>
    tpu.vector_store %arg7[%c2, %c0_21], %94 {strides = array<i32>} : memref<8x32xf32, #tpu.memory_space<vmem>>, vector<1x32xf32>,
    %96 = vector.extract_strided_slice %11 {offsets = [3, 0], sizes = [1, 128], strides = [1, 1]} : vector<8x128xf32> to vector<1x128xf32>
    %97 = arith.truncf %94 : vector<1x32xf32> to vector<1x32xbf16>
    %cst_22 = arith.constant dense<0.000000e+00> : vector<1x128xf32>
    %98 = tpu.matmul %97, %18, %cst_22 {dimension_numbers = #tpu.dot_dimension_numbers<[1], [0], [0], [1], [0, 0, 1, 1], [], []>} : vector<1x32xbf16>, vector<32x128xbf16>, vector<1x128xf32> -> vector<1x128xf32>
    %99 = arith.addf %96, %98 : vector<1x128xf32>
    %100 = arith.addf %99, %99 : vector<1x128xf32>
    %101 = arith.select %17, %100, %99 : vector<1x128xi1>, vector<1x128xf32>
    %102 = arith.negf %101 : vector<1x128xf32>
    %103 = math.exp %102 : vector<1x128xf32>
    %cst_23 = arith.constant 1.000000e+00 : f32
    %104 = vector.broadcast %cst_23 : f32 to vector<1x128xf32>
    %105 = arith.addf %104, %103 : vector<1x128xf32>
    %106 = arith.divf %104, %105 : vector<1x128xf32>
    %107 = arith.addf %106, %106 : vector<1x128xf32>
    %cst_24 = arith.constant 1.000000e+00 : f32
    %108 = vector.broadcast %cst_24 : f32 to vector<1x128xf32>
    %109 = arith.subf %107, %108 : vector<1x128xf32>
    %110 = arith.select %17, %109, %106 : vector<1x128xi1>, vector<1x128xf32>
    %111 = vector.extract_strided_slice %110 {offsets = [0, 0], sizes = [1, 32], strides = [1, 1]} : vector<1x128xf32> to vector<1x32xf32>
    %112 = vector.extract_strided_slice %110 {offsets = [0, 32], sizes = [1, 32], strides = [1, 1]} : vector<1x128xf32> to vector<1x32xf32>
    %113 = vector.extract_strided_slice %110 {offsets = [0, 64], sizes = [1, 32], strides = [1, 1]} : vector<1x128xf32> to vector<1x32xf32>
    %114 = vector.extract_strided_slice %110 {offsets = [0, 96], sizes = [1, 32], strides = [1, 1]} : vector<1x128xf32> to vector<1x32xf32>
    %115 = arith.mulf %112, %92 : vector<1x32xf32>
    %116 = arith.mulf %111, %113 : vector<1x32xf32>
    %117 = arith.addf %115, %116 : vector<1x32xf32>
    %118 = math.tanh %117 : vector<1x32xf32>
    %119 = arith.mulf %114, %118 : vector<1x32xf32>
    %c3 = arith.constant 3 : index
    %c0_25 = arith.constant 0 : index
    %120 = vector.load %arg7[%c3, %c0_25] : memref<8x32xf32, #tpu.memory_space<vmem>>, vector<1x32xf32>
    tpu.vector_store %arg7[%c3, %c0_25], %119 {strides = array<i32>} : memref<8x32xf32, #tpu.memory_space<vmem>>, vector<1x32xf32>,
    %121 = vector.extract_strided_slice %11 {offsets = [4, 0], sizes = [1, 128], strides = [1, 1]} : vector<8x128xf32> to vector<1x128xf32>
    %122 = arith.truncf %119 : vector<1x32xf32> to vector<1x32xbf16>
    %cst_26 = arith.constant dense<0.000000e+00> : vector<1x128xf32>
    %123 = tpu.matmul %122, %18, %cst_26 {dimension_numbers = #tpu.dot_dimension_numbers<[1], [0], [0], [1], [0, 0, 1, 1], [], []>} : vector<1x32xbf16>, vector<32x128xbf16>, vector<1x128xf32> -> vector<1x128xf32>
    %124 = arith.addf %121, %123 : vector<1x128xf32>
    %125 = arith.addf %124, %124 : vector<1x128xf32>
    %126 = arith.select %17, %125, %124 : vector<1x128xi1>, vector<1x128xf32>
    %127 = arith.negf %126 : vector<1x128xf32>
    %128 = math.exp %127 : vector<1x128xf32>
    %cst_27 = arith.constant 1.000000e+00 : f32
    %129 = vector.broadcast %cst_27 : f32 to vector<1x128xf32>
    %130 = arith.addf %129, %128 : vector<1x128xf32>
    %131 = arith.divf %129, %130 : vector<1x128xf32>
    %132 = arith.addf %131, %131 : vector<1x128xf32>
    %cst_28 = arith.constant 1.000000e+00 : f32
    %133 = vector.broadcast %cst_28 : f32 to vector<1x128xf32>
    %134 = arith.subf %132, %133 : vector<1x128xf32>
    %135 = arith.select %17, %134, %131 : vector<1x128xi1>, vector<1x128xf32>
    %136 = vector.extract_strided_slice %135 {offsets = [0, 0], sizes = [1, 32], strides = [1, 1]} : vector<1x128xf32> to vector<1x32xf32>
    %137 = vector.extract_strided_slice %135 {offsets = [0, 32], sizes = [1, 32], strides = [1, 1]} : vector<1x128xf32> to vector<1x32xf32>
    %138 = vector.extract_strided_slice %135 {offsets = [0, 64], sizes = [1, 32], strides = [1, 1]} : vector<1x128xf32> to vector<1x32xf32>
    %139 = vector.extract_strided_slice %135 {offsets = [0, 96], sizes = [1, 32], strides = [1, 1]} : vector<1x128xf32> to vector<1x32xf32>
    %140 = arith.mulf %137, %117 : vector<1x32xf32>
    %141 = arith.mulf %136, %138 : vector<1x32xf32>
    %142 = arith.addf %140, %141 : vector<1x32xf32>
    %143 = math.tanh %142 : vector<1x32xf32>
    %144 = arith.mulf %139, %143 : vector<1x32xf32>
    %c4 = arith.constant 4 : index
    %c0_29 = arith.constant 0 : index
    %145 = vector.load %arg7[%c4, %c0_29] : memref<8x32xf32, #tpu.memory_space<vmem>>, vector<1x32xf32>
    tpu.vector_store %arg7[%c4, %c0_29], %144 {strides = array<i32>} : memref<8x32xf32, #tpu.memory_space<vmem>>, vector<1x32xf32>,
    %146 = vector.extract_strided_slice %11 {offsets = [5, 0], sizes = [1, 128], strides = [1, 1]} : vector<8x128xf32> to vector<1x128xf32>
    %147 = arith.truncf %144 : vector<1x32xf32> to vector<1x32xbf16>
    %cst_30 = arith.constant dense<0.000000e+00> : vector<1x128xf32>
    %148 = tpu.matmul %147, %18, %cst_30 {dimension_numbers = #tpu.dot_dimension_numbers<[1], [0], [0], [1], [0, 0, 1, 1], [], []>} : vector<1x32xbf16>, vector<32x128xbf16>, vector<1x128xf32> -> vector<1x128xf32>
    %149 = arith.addf %146, %148 : vector<1x128xf32>
    %150 = arith.addf %149, %149 : vector<1x128xf32>
    %151 = arith.select %17, %150, %149 : vector<1x128xi1>, vector<1x128xf32>
    %152 = arith.negf %151 : vector<1x128xf32>
    %153 = math.exp %152 : vector<1x128xf32>
    %cst_31 = arith.constant 1.000000e+00 : f32
    %154 = vector.broadcast %cst_31 : f32 to vector<1x128xf32>
    %155 = arith.addf %154, %153 : vector<1x128xf32>
    %156 = arith.divf %154, %155 : vector<1x128xf32>
    %157 = arith.addf %156, %156 : vector<1x128xf32>
    %cst_32 = arith.constant 1.000000e+00 : f32
    %158 = vector.broadcast %cst_32 : f32 to vector<1x128xf32>
    %159 = arith.subf %157, %158 : vector<1x128xf32>
    %160 = arith.select %17, %159, %156 : vector<1x128xi1>, vector<1x128xf32>
    %161 = vector.extract_strided_slice %160 {offsets = [0, 0], sizes = [1, 32], strides = [1, 1]} : vector<1x128xf32> to vector<1x32xf32>
    %162 = vector.extract_strided_slice %160 {offsets = [0, 32], sizes = [1, 32], strides = [1, 1]} : vector<1x128xf32> to vector<1x32xf32>
    %163 = vector.extract_strided_slice %160 {offsets = [0, 64], sizes = [1, 32], strides = [1, 1]} : vector<1x128xf32> to vector<1x32xf32>
    %164 = vector.extract_strided_slice %160 {offsets = [0, 96], sizes = [1, 32], strides = [1, 1]} : vector<1x128xf32> to vector<1x32xf32>
    %165 = arith.mulf %162, %142 : vector<1x32xf32>
    %166 = arith.mulf %161, %163 : vector<1x32xf32>
    %167 = arith.addf %165, %166 : vector<1x32xf32>
    %168 = math.tanh %167 : vector<1x32xf32>
    %169 = arith.mulf %164, %168 : vector<1x32xf32>
    %c5 = arith.constant 5 : index
    %c0_33 = arith.constant 0 : index
    %170 = vector.load %arg7[%c5, %c0_33] : memref<8x32xf32, #tpu.memory_space<vmem>>, vector<1x32xf32>
    tpu.vector_store %arg7[%c5, %c0_33], %169 {strides = array<i32>} : memref<8x32xf32, #tpu.memory_space<vmem>>, vector<1x32xf32>,
    %171 = vector.extract_strided_slice %11 {offsets = [6, 0], sizes = [1, 128], strides = [1, 1]} : vector<8x128xf32> to vector<1x128xf32>
    %172 = arith.truncf %169 : vector<1x32xf32> to vector<1x32xbf16>
    %cst_34 = arith.constant dense<0.000000e+00> : vector<1x128xf32>
    %173 = tpu.matmul %172, %18, %cst_34 {dimension_numbers = #tpu.dot_dimension_numbers<[1], [0], [0], [1], [0, 0, 1, 1], [], []>} : vector<1x32xbf16>, vector<32x128xbf16>, vector<1x128xf32> -> vector<1x128xf32>
    %174 = arith.addf %171, %173 : vector<1x128xf32>
    %175 = arith.addf %174, %174 : vector<1x128xf32>
    %176 = arith.select %17, %175, %174 : vector<1x128xi1>, vector<1x128xf32>
    %177 = arith.negf %176 : vector<1x128xf32>
    %178 = math.exp %177 : vector<1x128xf32>
    %cst_35 = arith.constant 1.000000e+00 : f32
    %179 = vector.broadcast %cst_35 : f32 to vector<1x128xf32>
    %180 = arith.addf %179, %178 : vector<1x128xf32>
    %181 = arith.divf %179, %180 : vector<1x128xf32>
    %182 = arith.addf %181, %181 : vector<1x128xf32>
    %cst_36 = arith.constant 1.000000e+00 : f32
    %183 = vector.broadcast %cst_36 : f32 to vector<1x128xf32>
    %184 = arith.subf %182, %183 : vector<1x128xf32>
    %185 = arith.select %17, %184, %181 : vector<1x128xi1>, vector<1x128xf32>
    %186 = vector.extract_strided_slice %185 {offsets = [0, 0], sizes = [1, 32], strides = [1, 1]} : vector<1x128xf32> to vector<1x32xf32>
    %187 = vector.extract_strided_slice %185 {offsets = [0, 32], sizes = [1, 32], strides = [1, 1]} : vector<1x128xf32> to vector<1x32xf32>
    %188 = vector.extract_strided_slice %185 {offsets = [0, 64], sizes = [1, 32], strides = [1, 1]} : vector<1x128xf32> to vector<1x32xf32>
    %189 = vector.extract_strided_slice %185 {offsets = [0, 96], sizes = [1, 32], strides = [1, 1]} : vector<1x128xf32> to vector<1x32xf32>
    %190 = arith.mulf %187, %167 : vector<1x32xf32>
    %191 = arith.mulf %186, %188 : vector<1x32xf32>
    %192 = arith.addf %190, %191 : vector<1x32xf32>
    %193 = math.tanh %192 : vector<1x32xf32>
    %194 = arith.mulf %189, %193 : vector<1x32xf32>
    %c6 = arith.constant 6 : index
    %c0_37 = arith.constant 0 : index
    %195 = vector.load %arg7[%c6, %c0_37] : memref<8x32xf32, #tpu.memory_space<vmem>>, vector<1x32xf32>
    tpu.vector_store %arg7[%c6, %c0_37], %194 {strides = array<i32>} : memref<8x32xf32, #tpu.memory_space<vmem>>, vector<1x32xf32>,
    %196 = vector.extract_strided_slice %11 {offsets = [7, 0], sizes = [1, 128], strides = [1, 1]} : vector<8x128xf32> to vector<1x128xf32>
    %197 = arith.truncf %194 : vector<1x32xf32> to vector<1x32xbf16>
    %cst_38 = arith.constant dense<0.000000e+00> : vector<1x128xf32>
    %198 = tpu.matmul %197, %18, %cst_38 {dimension_numbers = #tpu.dot_dimension_numbers<[1], [0], [0], [1], [0, 0, 1, 1], [], []>} : vector<1x32xbf16>, vector<32x128xbf16>, vector<1x128xf32> -> vector<1x128xf32>
    %199 = arith.addf %196, %198 : vector<1x128xf32>
    %200 = arith.addf %199, %199 : vector<1x128xf32>
    %201 = arith.select %17, %200, %199 : vector<1x128xi1>, vector<1x128xf32>
    %202 = arith.negf %201 : vector<1x128xf32>
    %203 = math.exp %202 : vector<1x128xf32>
    %cst_39 = arith.constant 1.000000e+00 : f32
    %204 = vector.broadcast %cst_39 : f32 to vector<1x128xf32>
    %205 = arith.addf %204, %203 : vector<1x128xf32>
    %206 = arith.divf %204, %205 : vector<1x128xf32>
    %207 = arith.addf %206, %206 : vector<1x128xf32>
    %cst_40 = arith.constant 1.000000e+00 : f32
    %208 = vector.broadcast %cst_40 : f32 to vector<1x128xf32>
    %209 = arith.subf %207, %208 : vector<1x128xf32>
    %210 = arith.select %17, %209, %206 : vector<1x128xi1>, vector<1x128xf32>
    %211 = vector.extract_strided_slice %210 {offsets = [0, 0], sizes = [1, 32], strides = [1, 1]} : vector<1x128xf32> to vector<1x32xf32>
    %212 = vector.extract_strided_slice %210 {offsets = [0, 32], sizes = [1, 32], strides = [1, 1]} : vector<1x128xf32> to vector<1x32xf32>
    %213 = vector.extract_strided_slice %210 {offsets = [0, 64], sizes = [1, 32], strides = [1, 1]} : vector<1x128xf32> to vector<1x32xf32>
    %214 = vector.extract_strided_slice %210 {offsets = [0, 96], sizes = [1, 32], strides = [1, 1]} : vector<1x128xf32> to vector<1x32xf32>
    %215 = arith.mulf %212, %192 : vector<1x32xf32>
    %216 = arith.mulf %211, %213 : vector<1x32xf32>
    %217 = arith.addf %215, %216 : vector<1x32xf32>
    %218 = math.tanh %217 : vector<1x32xf32>
    %219 = arith.mulf %214, %218 : vector<1x32xf32>
    %c7 = arith.constant 7 : index
    %c0_41 = arith.constant 0 : index
    %220 = vector.load %arg7[%c7, %c0_41] : memref<8x32xf32, #tpu.memory_space<vmem>>, vector<1x32xf32>
    tpu.vector_store %arg7[%c7, %c0_41], %219 {strides = array<i32>} : memref<8x32xf32, #tpu.memory_space<vmem>>, vector<1x32xf32>,
    %c0_42 = arith.constant 0 : index
    %c0_43 = arith.constant 0 : index
    %221 = vector.load %arg7[%c0_42, %c0_43] : memref<8x32xf32, #tpu.memory_space<vmem>>, vector<8x32xf32>
    %222 = arith.truncf %221 : vector<8x32xf32> to vector<8x32xbf16>
    %c0_44 = arith.constant 0 : index
    %c0_45 = arith.constant 0 : index
    %223 = vector.load %arg4[%c0_44, %c0_45] : memref<32x8xbf16, #tpu.memory_space<vmem>>, vector<32x8xbf16>
    %cst_46 = arith.constant dense<0.000000e+00> : vector<8x8xf32>
    %224 = tpu.matmul %222, %223, %cst_46 {dimension_numbers = #tpu.dot_dimension_numbers<[1], [0], [0], [1], [0, 0, 1, 1], [], []>} : vector<8x32xbf16>, vector<32x8xbf16>, vector<8x8xf32> -> vector<8x8xf32>
    %c0_47 = arith.constant 0 : index
    %c0_48 = arith.constant 0 : index
    %225 = vector.load %arg5[%c0_47, %c0_48] : memref<1x8xf32, #tpu.memory_space<vmem>>, vector<1x8xf32>
    %226 = vector.broadcast %225 : vector<1x8xf32> to vector<8x8xf32>
    %227 = arith.addf %224, %226 : vector<8x8xf32>
    %cst_49 = arith.constant dense<0xFF800000> : vector<8xf32>
    %228 = vector.multi_reduction <maximumf>, %227, %cst_49 [1] : vector<8x8xf32> to vector<8xf32>
    %229 = vector.shape_cast %228 : vector<8xf32> to vector<8x1xf32>
    %230 = vector.broadcast %229 : vector<8x1xf32> to vector<8x8xf32>
    %231 = arith.subf %227, %230 : vector<8x8xf32>
    %232 = math.exp %231 : vector<8x8xf32>
    %cst_50 = arith.constant dense<0.000000e+00> : vector<8xf32>
    %233 = vector.multi_reduction <add>, %232, %cst_50 [1] : vector<8x8xf32> to vector<8xf32>
    %234 = vector.shape_cast %233 : vector<8xf32> to vector<8x1xf32>
    %235 = math.log %234 : vector<8x1xf32>
    %236 = vector.broadcast %235 : vector<8x1xf32> to vector<8x8xf32>
    %237 = arith.subf %231, %236 : vector<8x8xf32>
    %c0_51 = arith.constant 0 : index
    %c0_52 = arith.constant 0 : index
    %238 = vector.load %arg6[%c0_51, %c0_52] : memref<8x8xf32, #tpu.memory_space<vmem>>, vector<8x8xf32>
    tpu.vector_store %arg6[%c0_51, %c0_52], %237 {strides = array<i32>} : memref<8x8xf32, #tpu.memory_space<vmem>>, vector<8x8xf32>,
    return
  }
}

</mosaic_0001>

<bundles_post_ra>
// kernel: warm_tagger_forward.1
= control target key start
LH: loop header
LB: loop body
LE: loop exit
PB: predicated region body
PF: predicated region fallthrough
CT: control target
= control target key end

     0   :  { %v1143_v2 = vmov 0   ;;  %v1144_v3 = vmov 0.0   ;;  %vm1145_vm0 = vmmov 0   ;;  %s1406_s0 = inlined_call_operand.vmem [shape: s32[8,1], index: 0, kind: input, shape index: {}]   ;;  %s1407_s1 = inlined_call_operand.vmem [shape: bf16[16,128], index: 1, kind: input, shape index: {}]   ;;  %s1408_s2 = inlined_call_operand.vmem [shape: f32[1,128], index: 2, kind: input, shape index: {}]   ;;  %s1409_s3 = inlined_call_operand.vmem [shape: bf16[32,128], index: 3, kind: input, shape index: {}]   ;;  %s1410_s4 = inlined_call_operand.vmem [shape: bf16[32,8], index: 4, kind: input, shape index: {}]   ;;  %s1411_s5 = inlined_call_operand.vmem [shape: f32[1,8], index: 5, kind: input, shape index: {}]   ;;  %s1412_s6 = inlined_call_operand.hbm [shape: f32[8,8], index: 6, kind: output, shape index: {}]  }
   0x1   :  { %v25_v0 = vld [vmem:[%s1406_s0] sm:$0xff]  ;;  %1061 = vset.pattern.permute.xlu0 %v1143_v2  ;;  %983 = vmatprep.subr.bf16.mxu1 %v1144_v3  ;;  %v1197_v4 = vld [vmem:[%s1409_s3 + $0x8] sm:$0xff]  }
   0x2   :  { %v1190_v1 = vld [vmem:[%s1409_s3] sm:$0xff]   ;;  %29 = vperm.xlu0 %1061, %v25_v0   ;;  %977 = vmatprep.subr.bf16.mxu0 %v1144_v3 }
   0x3   :  { %984 = vmatpush3.bf16.msra.mxu1 %v1190_v1  ;;  %v1064_v5 = vld [vmem:[%s1407_s1] sm:$0xff]   ;;  %987 = vmatprep.mubr.msk.bf16.mxu1 %vm1145_vm0, %v1144_v3 }
   0x4   :  { %985 = vmatprep.subr.bf16.mxu1 %v1144_v3  ;;  %979 = vmatprep.mubr.msk.bf16.mxu0 %vm1145_vm0, %v1144_v3 }
   0x5   :  { %978 = vmatpush3.bf16.msra.mxu0 %v1064_v5 }
   0x6   :  { %991 = vmatprep.subr.bf16.mxu0 %v1144_v3 }
   0x7   :  { %986 = vmatpush3.bf16.msra.mxu1 %v1197_v4 }
   0x8   :  { %11 = vsyncpa [#allocation4], 0  ;;  %999 = vmatprep.subr.bf16.mxu1 %v1144_v3  ;;  %v26_v6 = vlaneseq  ;;  %vm50_vm2 = vcmask 130048   ;;  %v916_v15 = vld [vmem:[%s1408_s2] ss:$0 sm:$0xff]  ;;  %s1146_s2 = smov 64  }
   0x9   :  { %s1147_s28 = smov 32   ;;  %vm113_vm6 = vcmask 261120   ;;  %vm190_vm7 = vcmask 253952   ;;  %vm368_vm8 = vcmask 256002   ;;  %vm548_vm9 = vcmask 258052  }
   0xa   :  { %988 = vmatmul.mubr.bf16.vlgmr.msra.gmra.mrb[0].mxu1 %v1143_v2  ;;  %v27_v7 = vand.u32 127, %v26_v6  ;;  %vm728_vm10 = vcmask 260102   ;;  %vm278_vm11 = vcmask 254977   ;;  %vm457_vm12 = vcmask 257027  }
   0xb   :  { %1000 = vmatpush3.bf16.msra.mxu1 %v1190_v1  ;;  %1003 = vmatprep.mubr.msk.bf16.mxu1 %vm1145_vm0, %v1144_v3  ;;  %vm637_vm13 = vcmask 259077   ;;  %vm817_vm14 = vcmask 261127   ;;  %vm887_vm15 = vcmask 64512  }
   0xc   :  { %1001 = vmatprep.subr.bf16.mxu1 %v1144_v3  ;;  %vm94_vm3 = vcmp.ge.s32.totalorder %v27_v7, 64  ;;  %vm95_vm4 = vcmp.lt.s32.totalorder %v27_v7, 96 }
   0xd   :  { %vm1230_vm5 = vmand %vm94_vm3, %vm95_vm4 }
   0xf   :  { %1002 = vmatpush3.bf16.msra.mxu1 %v1197_v4 }
  0x10   :  { %1015 = vmatprep.subr.bf16.mxu1 %v1144_v3 }
  0x81   :  { %v30_v8 = vpop.permute.xlu0 %29 }
  0x82   :  { %vm31_vm1 = vcmp.eq.s32.totalorder %v27_v7, %v30_v8 }
  0x83   :  { %v915_v9 = vsel %vm31_vm1, 1.0, %v1144_v3 }
  0x84   :  { %v34_v10 = vpack.c.bf16 %v915_v9, %v915_v9 }
  0x86   :  { %980 = vmatmul.mubr.msk.bf16.vlgmr.msra.gmra.mrb[0].mxu0 %vm50_vm2, %v34_v10 }
  0x87   :  { %992 = vmatpush3.bf16.msra.mxu0 %v1190_v1  ;;  %995 = vmatprep.mubr.msk.bf16.mxu0 %vm1145_vm0, %v1144_v3 }
  0x88   :  { %993 = vmatprep.subr.bf16.mxu0 %v1144_v3 }
  0x8b   :  { %994 = vmatpush3.bf16.msra.mxu0 %v1197_v4 }
  0x8c   :  { %1007 = vmatprep.subr.bf16.mxu0 %v1144_v3 }
  0xdd   :  { %v151_v11 = vpop.f32.mrb[0].mxu1 }
  0xde   :  { %v989_v12 = vpop.f32.mrb[1].mxu1 }
  0xdf   :  { %v154_v13 = vpop.f32.mrb[2].mxu1 }
  0xe0   :  { %v990_v14 = vpop.f32.mrb[3].mxu1 }
 0x159   :  { %v88_v16 = vpop.f32.mrb[0].mxu0 }
 0x15a   :  { %v1227_v17 = vadd.f32 %v916_v15, %v88_v16  ;;  %v981_v18 = vpop.f32.mrb[1].mxu0 }
 0x15b   :  { %v91_v19 = vpop.f32.mrb[2].mxu0 }
 0x15c   :  { %v982_v20 = vpop.f32.mrb[3].mxu0  ;;  %v157_v21 = vadd.f32 %v151_v11, %v1227_v17 }
 0x15e   :  { %v158_v23 = vadd.f32 %v157_v21, %v157_v21 }
 0x160   :  { %v159_v24 = vsel %vm1230_vm5, %v158_v23, %v157_v21 }
 0x161   :  { %v921_v25 = vmul.f32 -1.442695, %v159_v24 }
 0x163   :  { %1067 = vpow2.f32 %v921_v25 }
 0x16d   :  { %v1068_v26 = vpop.eup %1067 }
 0x16e   :  { %v163_v27 = vadd.f32 1.0, %v1068_v26 }
 0x170   :  { %1069 = vrcp.f32 %v163_v27 }
 0x17a   :  { %v1070_v28 = vpop.eup %1069 }
 0x17b   :  { %v166_v29 = vadd.f32 %v1070_v28, %v1070_v28 }
 0x17d   :  { %v922_v30 = vadd.f32 -1.0, %v166_v29 }
 0x17f   :  { %v168_v31 = vsel %vm1230_vm5, %v922_v30, %v1070_v28 }
 0x180   :  { %171 = vrot.lane.b32.xlu0 %v168_v31, %s1146_s2  ;;  %v169_v34 = vmul.f32 0.0, %v168_v31 }
 0x1f2   :  { %v172_v32 = vpop.permute.xlu0 %171 }
 0x1f3   :  { %v174_v33 = vmul.f32 %v172_v32, %v168_v31 }
 0x1f5   :  { %176 = vrot.lane.b32.xlu1 %v174_v33, %s1147_s28 }
 0x267   :  { %v177_v35 = vpop.permute.xlu1 %176 }
 0x268   :  { %v179_v36 = vadd.f32 %v177_v35, %v169_v34 }
 0x26a   :  { %1071 = vtanh.f32 %v179_v36  ;;  %v255_v59 = vrot.slane %v179_v36, 7 }
 0x274   :  { %v1072_v37 = vpop.eup %1071 }
 0x275   :  { %182 = vrot.lane.b32.xlu1 %v1072_v37, %s1146_s2 }
 0x2e7   :  { %v183_v38 = vpop.permute.xlu1 %182 }
 0x2e8   :  { %v1241_v39 = vmul.f32 %v183_v38, %v168_v31 }
 0x2ea   :  { %v192_v40 = vpack.c.bf16 %v1241_v39, %v1241_v39 }
 0x2ec   :  { %194 = vrot.lane.b32.xlu0 %v192_v40, %s1147_s28 }
 0x35e   :  { %v195_v41 = vpop.permute.xlu0 %194 }
 0x35f   :  { %996 = vmatmul.mubr.msk.bf16.vlgmr.msra.gmra.mrb[4].mxu0 %vm113_vm6, %v195_v41 }
 0x360   :  { %1008 = vmatpush3.bf16.msra.mxu0 %v1190_v1  ;;  %1011 = vmatprep.mubr.msk.bf16.mxu0 %vm1145_vm0, %v1144_v3 }
 0x361   :  { %1009 = vmatprep.subr.bf16.mxu0 %v1144_v3 }
 0x364   :  { %1010 = vmatpush3.bf16.msra.mxu0 %v1197_v4 }
 0x365   :  { %1023 = vmatprep.subr.bf16.mxu0 %v1144_v3 }
 0x432   :  { %v233_v42 = vpop.f32.mrb[4].mxu0 }
 0x433   :  { %v240_v43 = vrot.slane %v233_v42, 7  ;;  %v997_v44 = vpop.f32.mrb[5].mxu0 }
 0x434   :  { %v236_v45 = vpop.f32.mrb[6].mxu0 }
 0x435   :  { %v242_v46 = vadd.f32 %v240_v43, %v1227_v17  ;;  %v998_v47 = vpop.f32.mrb[7].mxu0 }
 0x437   :  { %v243_v48 = vadd.f32 %v242_v46, %v242_v46 }
 0x439   :  { %v244_v49 = vsel %vm1230_vm5, %v243_v48, %v242_v46 }
 0x43a   :  { %v924_v50 = vmul.f32 -1.442695, %v244_v49 }
 0x43c   :  { %1073 = vpow2.f32 %v924_v50 }
 0x446   :  { %v1074_v51 = vpop.eup %1073 }
 0x447   :  { %v248_v52 = vadd.f32 1.0, %v1074_v51 }
 0x449   :  { %1075 = vrcp.f32 %v248_v52 }
 0x453   :  { %v1076_v53 = vpop.eup %1075 }
 0x454   :  { %v251_v54 = vadd.f32 %v1076_v53, %v1076_v53 }
 0x456   :  { %v925_v55 = vadd.f32 -1.0, %v251_v54 }
 0x458   :  { %v253_v56 = vsel %vm1230_vm5, %v925_v55, %v1076_v53 }
 0x459   :  { %259 = vrot.lane.b32.xlu1 %v253_v56, %s1146_s2  ;;  %v257_v60 = vmul.f32 %v255_v59, %v253_v56 }
 0x4cb   :  { %v260_v57 = vpop.permute.xlu1 %259 }
 0x4cc   :  { %v262_v58 = vmul.f32 %v260_v57, %v253_v56 }
 0x4ce   :  { %264 = vrot.lane.b32.xlu0 %v262_v58, %s1147_s28 }
 0x540   :  { %v265_v61 = vpop.permute.xlu0 %264 }
 0x541   :  { %v267_v62 = vadd.f32 %v265_v61, %v257_v60 }
 0x543   :  { %1077 = vtanh.f32 %v267_v62  ;;  %v345_v27 = vrot.slane %v267_v62, 7 }
 0x54d   :  { %v1078_v63 = vpop.eup %1077 }
 0x54e   :  { %270 = vrot.lane.b32.xlu1 %v1078_v63, %s1146_s2 }
 0x5c0   :  { %v271_v0 = vpop.permute.xlu1 %270 }
 0x5c1   :  { %v1261_v2 = vmul.f32 %v271_v0, %v253_v56 }
 0x5c3   :  { %v280_v5 = vpack.c.bf16 %v1261_v2, %v1261_v2 }
 0x5c5   :  { %v282_v6 = vshrl.u32 %v280_v5, 16 }
 0x5c7   :  { %284 = vrot.lane.b32.xlu0 %v282_v6, %s1147_s28 }
 0x639   :  { %v285_v7 = vpop.permute.xlu0 %284 }
 0x63a   :  { %1004 = vmatmul.mubr.msk.bf16.vlgmr.msra.gmra.mrb[4].mxu1 %vm113_vm6, %v285_v7 }
 0x63b   :  { %1016 = vmatpush3.bf16.msra.mxu1 %v1190_v1  ;;  %1019 = vmatprep.mubr.msk.bf16.mxu1 %vm1145_vm0, %v1144_v3 }
 0x63c   :  { %1017 = vmatprep.subr.bf16.mxu1 %v1144_v3 }
 0x63f   :  { %1018 = vmatpush3.bf16.msra.mxu1 %v1197_v4 }
 0x640   :  { %1031 = vmatprep.subr.bf16.mxu1 %v1144_v3 }
 0x70d   :  { %v323_v8 = vpop.f32.mrb[4].mxu1 }
 0x70e   :  { %v330_v9 = vrot.slane %v323_v8, 6  ;;  %v1005_v10 = vpop.f32.mrb[5].mxu1 }
 0x70f   :  { %v326_v11 = vpop.f32.mrb[6].mxu1 }
 0x710   :  { %v332_v12 = vadd.f32 %v330_v9, %v1227_v17  ;;  %v1006_v13 = vpop.f32.mrb[7].mxu1 }
 0x712   :  { %v333_v14 = vadd.f32 %v332_v12, %v332_v12 }
 0x714   :  { %v334_v15 = vsel %vm1230_vm5, %v333_v14, %v332_v12 }
 0x715   :  { %v927_v16 = vmul.f32 -1.442695, %v334_v15 }
 0x717   :  { %1079 = vpow2.f32 %v927_v16 }
 0x721   :  { %v1080_v18 = vpop.eup %1079 }
 0x722   :  { %v338_v19 = vadd.f32 1.0, %v1080_v18 }
 0x724   :  { %1081 = vrcp.f32 %v338_v19 }
 0x72e   :  { %v1082_v20 = vpop.eup %1081 }
 0x72f   :  { %v341_v21 = vadd.f32 %v1082_v20, %v1082_v20 }
 0x731   :  { %v928_v23 = vadd.f32 -1.0, %v341_v21 }
 0x733   :  { %v343_v24 = vsel %vm1230_vm5, %v928_v23, %v1082_v20 }
 0x734   :  { %349 = vrot.lane.b32.xlu1 %v343_v24, %s1146_s2  ;;  %v347_v28 = vmul.f32 %v345_v27, %v343_v24 }
 0x7a6   :  { %v350_v25 = vpop.permute.xlu1 %349 }
 0x7a7   :  { %v352_v26 = vmul.f32 %v350_v25, %v343_v24 }
 0x7a9   :  { %354 = vrot.lane.b32.xlu0 %v352_v26, %s1147_s28 }
 0x81b   :  { %v355_v29 = vpop.permute.xlu0 %354 }
 0x81c   :  { %v357_v30 = vadd.f32 %v355_v29, %v347_v28 }
 0x81e   :  { %1083 = vtanh.f32 %v357_v30  ;;  %v434_v55 = vrot.slane %v357_v30, 7 }
 0x828   :  { %v1084_v31 = vpop.eup %1083 }
 0x829   :  { %360 = vrot.lane.b32.xlu1 %v1084_v31, %s1146_s2 }
 0x89b   :  { %v361_v32 = vpop.permute.xlu1 %360 }
 0x89c   :  { %v1281_v33 = vmul.f32 %v361_v32, %v343_v24 }
 0x89e   :  { %v370_v34 = vpack.c.bf16 %v1281_v33, %v1281_v33 }
 0x8a0   :  { %v372_v35 = vrot.slane %v370_v34, 1 }
 0x8a2   :  { %373 = vrot.lane.b32.xlu0 %v372_v35, %s1147_s28 }
 0x914   :  { %v374_v36 = vpop.permute.xlu0 %373 }
 0x915   :  { %1012 = vmatmul.mubr.msk.bf16.vlgmr.msra.gmra.mrb[8].mxu0 %vm113_vm6, %v374_v36 }
 0x916   :  { %1024 = vmatpush3.bf16.msra.mxu0 %v1190_v1  ;;  %1027 = vmatprep.mubr.msk.bf16.mxu0 %vm1145_vm0, %v1144_v3 }
 0x917   :  { %1025 = vmatprep.subr.bf16.mxu0 %v1144_v3 }
 0x91a   :  { %1026 = vmatpush3.bf16.msra.mxu0 %v1197_v4 }
 0x91b   :  { %1039 = vmatprep.subr.bf16.mxu0 %v1144_v3 }
 0x9e8   :  { %v412_v37 = vpop.f32.mrb[8].mxu0 }
 0x9e9   :  { %v419_v38 = vrot.slane %v412_v37, 5  ;;  %v1013_v40 = vpop.f32.mrb[9].mxu0 }
 0x9ea   :  { %v415_v41 = vpop.f32.mrb[10].mxu0 }
 0x9eb   :  { %v421_v42 = vadd.f32 %v419_v38, %v1227_v17  ;;  %v1014_v43 = vpop.f32.mrb[11].mxu0 }
 0x9ed   :  { %v422_v44 = vadd.f32 %v421_v42, %v421_v42 }
 0x9ef   :  { %v423_v45 = vsel %vm1230_vm5, %v422_v44, %v421_v42 }
 0x9f0   :  { %v930_v46 = vmul.f32 -1.442695, %v423_v45 }
 0x9f2   :  { %1085 = vpow2.f32 %v930_v46 }
 0x9fc   :  { %v1086_v47 = vpop.eup %1085 }
 0x9fd   :  { %v427_v48 = vadd.f32 1.0, %v1086_v47 }
 0x9ff   :  { %1087 = vrcp.f32 %v427_v48 }
 0xa09   :  { %v1088_v49 = vpop.eup %1087 }
 0xa0a   :  { %v430_v50 = vadd.f32 %v1088_v49, %v1088_v49 }
 0xa0c   :  { %v931_v51 = vadd.f32 -1.0, %v430_v50 }
 0xa0e   :  { %v432_v52 = vsel %vm1230_vm5, %v931_v51, %v1088_v49 }
 0xa0f   :  { %438 = vrot.lane.b32.xlu1 %v432_v52, %s1146_s2  ;;  %v436_v56 = vmul.f32 %v434_v55, %v432_v52 }
 0xa81   :  { %v439_v53 = vpop.permute.xlu1 %438 }
 0xa82   :  { %v441_v54 = vmul.f32 %v439_v53, %v432_v52 }
 0xa84   :  { %443 = vrot.lane.b32.xlu0 %v441_v54, %s1147_s28 }
 0xaf6   :  { %v444_v57 = vpop.permute.xlu0 %443 }
 0xaf7   :  { %v446_v58 = vadd.f32 %v444_v57, %v436_v56 }
 0xaf9   :  { %1089 = vtanh.f32 %v446_v58  ;;  %v525_v25 = vrot.slane %v446_v58, 7 }
 0xb03   :  { %v1090_v59 = vpop.eup %1089 }
 0xb04   :  { %449 = vrot.lane.b32.xlu1 %v1090_v59, %s1146_s2 }
 0xb76   :  { %v450_v60 = vpop.permute.xlu1 %449 }
 0xb77   :  { %v1301_v61 = vmul.f32 %v450_v60, %v432_v52 }
 0xb79   :  { %v459_v62 = vpack.c.bf16 %v1301_v61, %v1301_v61 }
 0xb7b   :  { %v461_v63 = vshrl.u32 %v459_v62, 16 }
 0xb7d   :  { %v463_v0 = vrot.slane %v461_v63, 1 }
 0xb7f   :  { %464 = vrot.lane.b32.xlu0 %v463_v0, %s1147_s28 }
 0xbf1   :  { %v465_v5 = vpop.permute.xlu0 %464 }
 0xbf2   :  { %1020 = vmatmul.mubr.msk.bf16.vlgmr.msra.gmra.mrb[8].mxu1 %vm113_vm6, %v465_v5 }
 0xbf3   :  { %1032 = vmatpush3.bf16.msra.mxu1 %v1190_v1  ;;  %1035 = vmatprep.mubr.msk.bf16.mxu1 %vm1145_vm0, %v1144_v3 }
 0xbf4   :  { %1033 = vmatprep.subr.bf16.mxu1 %v1144_v3 }
 0xbf7   :  { %1034 = vmatpush3.bf16.msra.mxu1 %v1197_v4 }
 0xbf8   :  { %1047 = vmatprep.subr.bf16.mxu1 %v1144_v3 }
 0xcc5   :  { %v503_v6 = vpop.f32.mrb[8].mxu1 }
 0xcc6   :  { %v510_v7 = vrot.slane %v503_v6, 4  ;;  %v1021_v8 = vpop.f32.mrb[9].mxu1 }
 0xcc7   :  { %v506_v9 = vpop.f32.mrb[10].mxu1 }
 0xcc8   :  { %v512_v10 = vadd.f32 %v510_v7, %v1227_v17  ;;  %v1022_v11 = vpop.f32.mrb[11].mxu1 }
 0xcca   :  { %v513_v12 = vadd.f32 %v512_v10, %v512_v10 }
 0xccc   :  { %v514_v13 = vsel %vm1230_vm5, %v513_v12, %v512_v10 }
 0xccd   :  { %v933_v14 = vmul.f32 -1.442695, %v514_v13 }
 0xccf   :  { %1091 = vpow2.f32 %v933_v14 }
 0xcd9   :  { %v1092_v15 = vpop.eup %1091 }
 0xcda   :  { %v518_v16 = vadd.f32 1.0, %v1092_v15 }
 0xcdc   :  { %1093 = vrcp.f32 %v518_v16 }
 0xce6   :  { %v1094_v18 = vpop.eup %1093 }
 0xce7   :  { %v521_v19 = vadd.f32 %v1094_v18, %v1094_v18 }
 0xce9   :  { %v934_v20 = vadd.f32 -1.0, %v521_v19 }
 0xceb   :  { %v523_v21 = vsel %vm1230_vm5, %v934_v20, %v1094_v18 }
 0xcec   :  { %529 = vrot.lane.b32.xlu1 %v523_v21, %s1146_s2  ;;  %v527_v26 = vmul.f32 %v525_v25, %v523_v21 }
 0xd5e   :  { %v530_v23 = vpop.permute.xlu1 %529 }
 0xd5f   :  { %v532_v24 = vmul.f32 %v530_v23, %v523_v21 }
 0xd61   :  { %534 = vrot.lane.b32.xlu0 %v532_v24, %s1147_s28 }
 0xdd3   :  { %v535_v27 = vpop.permute.xlu0 %534 }
 0xdd4   :  { %v537_v28 = vadd.f32 %v535_v27, %v527_v26 }
 0xdd6   :  { %1095 = vtanh.f32 %v537_v28  ;;  %v614_v52 = vrot.slane %v537_v28, 7 }
 0xde0   :  { %v1096_v29 = vpop.eup %1095 }
 0xde1   :  { %540 = vrot.lane.b32.xlu1 %v1096_v29, %s1146_s2 }
 0xe53   :  { %v541_v30 = vpop.permute.xlu1 %540 }
 0xe54   :  { %v1321_v31 = vmul.f32 %v541_v30, %v523_v21 }
 0xe56   :  { %v550_v32 = vpack.c.bf16 %v1321_v31, %v1321_v31 }
 0xe58   :  { %v552_v34 = vrot.slane %v550_v32, 2 }
 0xe5a   :  { %553 = vrot.lane.b32.xlu0 %v552_v34, %s1147_s28 }
 0xecc   :  { %v554_v35 = vpop.permute.xlu0 %553 }
 0xecd   :  { %1028 = vmatmul.mubr.msk.bf16.vlgmr.msra.gmra.mrb[12].mxu0 %vm113_vm6, %v554_v35 }
 0xece   :  { %1040 = vmatpush3.bf16.msra.mxu0 %v1190_v1  ;;  %1043 = vmatprep.mubr.msk.bf16.mxu0 %vm1145_vm0, %v1144_v3 }
 0xecf   :  { %1041 = vmatprep.subr.bf16.mxu0 %v1144_v3 }
 0xed2   :  { %1042 = vmatpush3.bf16.msra.mxu0 %v1197_v4 }
 0xfa0   :  { %v592_v36 = vpop.f32.mrb[12].mxu0 }
 0xfa1   :  { %v599_v37 = vrot.slane %v592_v36, 3  ;;  %v1029_v38 = vpop.f32.mrb[13].mxu0 }
 0xfa2   :  { %v595_v40 = vpop.f32.mrb[14].mxu0 }
 0xfa3   :  { %v601_v41 = vadd.f32 %v599_v37, %v1227_v17  ;;  %v1030_v42 = vpop.f32.mrb[15].mxu0 }
 0xfa5   :  { %v602_v43 = vadd.f32 %v601_v41, %v601_v41 }
 0xfa7   :  { %v603_v44 = vsel %vm1230_vm5, %v602_v43, %v601_v41 }
 0xfa8   :  { %v936_v45 = vmul.f32 -1.442695, %v603_v44 }
 0xfaa   :  { %1097 = vpow2.f32 %v936_v45 }
 0xfb4   :  { %v1098_v1 = vpop.eup %1097 }
 0xfb5   :  { %v607_v46 = vadd.f32 1.0, %v1098_v1 }
 0xfb7   :  { %1099 = vrcp.f32 %v607_v46 }
 0xfc1   :  { %v1100_v47 = vpop.eup %1099 }
 0xfc2   :  { %v610_v48 = vadd.f32 %v1100_v47, %v1100_v47 }
 0xfc4   :  { %v937_v49 = vadd.f32 -1.0, %v610_v48 }
 0xfc6   :  { %v612_v4 = vsel %vm1230_vm5, %v937_v49, %v1100_v47 }
 0xfc7   :  { %618 = vrot.lane.b32.xlu1 %v612_v4, %s1146_s2  ;;  %v616_v53 = vmul.f32 %v614_v52, %v612_v4 }
0x1039   :  { %v619_v50 = vpop.permute.xlu1 %618 }
0x103a   :  { %v621_v51 = vmul.f32 %v619_v50, %v612_v4 }
0x103c   :  { %623 = vrot.lane.b32.xlu0 %v621_v51, %s1147_s28 }
0x10ae   :  { %v624_v54 = vpop.permute.xlu0 %623 }
0x10af   :  { %v626_v55 = vadd.f32 %v624_v54, %v616_v53 }
0x10b1   :  { %1101 = vtanh.f32 %v626_v55  ;;  %v705_v23 = vrot.slane %v626_v55, 7 }
0x10bb   :  { %v1102_v56 = vpop.eup %1101 }
0x10bc   :  { %629 = vrot.lane.b32.xlu1 %v1102_v56, %s1146_s2  ;;  %v1066_v56 = vld [vmem:[%s1410_s4 + $0x8] sm:$0xff]  }
0x112e   :  { %v630_v57 = vpop.permute.xlu1 %629 }
0x112f   :  { %v1340_v58 = vmul.f32 %v630_v57, %v612_v4 }
0x1131   :  { %v639_v59 = vpack.c.bf16 %v1340_v58, %v1340_v58 }
0x1133   :  { %v641_v60 = vshrl.u32 %v639_v59, 16 }
0x1135   :  { %v643_v62 = vrot.slane %v641_v60, 2 }
0x1137   :  { %644 = vrot.lane.b32.xlu0 %v643_v62, %s1147_s28 }
0x11a9   :  { %v645_v63 = vpop.permute.xlu0 %644 }
0x11aa   :  { %1036 = vmatmul.mubr.msk.bf16.vlgmr.msra.gmra.mrb[12].mxu1 %vm113_vm6, %v645_v63 }
0x11ab   :  { %1051 = vmatprep.mubr.msk.bf16.mxu1 %vm1145_vm0, %v1144_v3 }
0x127d   :  { %v683_v0 = vpop.f32.mrb[12].mxu1 }
0x127e   :  { %v690_v5 = vrot.slane %v683_v0, 2  ;;  %v1037_v6 = vpop.f32.mrb[13].mxu1 }
0x127f   :  { %v686_v7 = vpop.f32.mrb[14].mxu1 }
0x1280   :  { %v692_v8 = vadd.f32 %v690_v5, %v1227_v17  ;;  %v1038_v9 = vpop.f32.mrb[15].mxu1 }
0x1282   :  { %v693_v10 = vadd.f32 %v692_v8, %v692_v8 }
0x1284   :  { %v694_v11 = vsel %vm1230_vm5, %v693_v10, %v692_v8 }
0x1285   :  { %v939_v12 = vmul.f32 -1.442695, %v694_v11 }
0x1287   :  { %1103 = vpow2.f32 %v939_v12 }
0x1291   :  { %v1104_v13 = vpop.eup %1103 }
0x1292   :  { %v698_v14 = vadd.f32 1.0, %v1104_v13 }
0x1294   :  { %1105 = vrcp.f32 %v698_v14 }
0x129e   :  { %v1106_v15 = vpop.eup %1105 }
0x129f   :  { %v701_v16 = vadd.f32 %v1106_v15, %v1106_v15 }
0x12a1   :  { %v940_v18 = vadd.f32 -1.0, %v701_v16 }
0x12a3   :  { %v703_v19 = vsel %vm1230_vm5, %v940_v18, %v1106_v15 }
0x12a4   :  { %709 = vrot.lane.b32.xlu1 %v703_v19, %s1146_s2  ;;  %v707_v24 = vmul.f32 %v705_v23, %v703_v19 }
0x1316   :  { %v710_v20 = vpop.permute.xlu1 %709 }
0x1317   :  { %v712_v21 = vmul.f32 %v710_v20, %v703_v19 }
0x1319   :  { %714 = vrot.lane.b32.xlu0 %v712_v21, %s1147_s28 }
0x138b   :  { %v715_v25 = vpop.permute.xlu0 %714 }
0x138c   :  { %v717_v26 = vadd.f32 %v715_v25, %v707_v24 }
0x138e   :  { %1107 = vtanh.f32 %v717_v26  ;;  %v794_v50 = vrot.slane %v717_v26, 7 }
0x1398   :  { %v1108_v27 = vpop.eup %1107 }
0x1399   :  { %720 = vrot.lane.b32.xlu1 %v1108_v27, %s1146_s2 }
0x140b   :  { %v721_v28 = vpop.permute.xlu1 %720 }
0x140c   :  { %v723_v29 = vmul.f32 %v721_v28, %v703_v19 }
0x140e   :  { %v730_v30 = vpack.c.bf16 %v723_v29, %v723_v29 }
0x1410   :  { %v732_v32 = vrot.slane %v730_v30, 3 }
0x1412   :  { %733 = vrot.lane.b32.xlu0 %v732_v32, %s1147_s28 }
0x1484   :  { %v734_v34 = vpop.permute.xlu0 %733 }
0x1485   :  { %1044 = vmatmul.mubr.msk.bf16.vlgmr.msra.gmra.mrb[16].mxu0 %vm113_vm6, %v734_v34 }
0x1558   :  { %v772_v35 = vpop.f32.mrb[16].mxu0 }
0x1559   :  { %v779_v36 = vrot.slane %v772_v35, 1  ;;  %v1045_v37 = vpop.f32.mrb[17].mxu0 }
0x155a   :  { %v775_v38 = vpop.f32.mrb[18].mxu0 }
0x155b   :  { %v781_v40 = vadd.f32 %v779_v36, %v1227_v17  ;;  %v1046_v41 = vpop.f32.mrb[19].mxu0 }
0x155d   :  { %v782_v42 = vadd.f32 %v781_v40, %v781_v40 }
0x155f   :  { %v783_v43 = vsel %vm1230_vm5, %v782_v42, %v781_v40 }
0x1560   :  { %v942_v44 = vmul.f32 -1.442695, %v783_v43 }
0x1562   :  { %1109 = vpow2.f32 %v942_v44 }
0x156c   :  { %v1110_v45 = vpop.eup %1109 }
0x156d   :  { %v787_v1 = vadd.f32 1.0, %v1110_v45 }
0x156f   :  { %1111 = vrcp.f32 %v787_v1 }
0x1579   :  { %v1112_v46 = vpop.eup %1111 }
0x157a   :  { %v790_v47 = vadd.f32 %v1112_v46, %v1112_v46 }
0x157c   :  { %v943_v48 = vadd.f32 -1.0, %v790_v47 }
0x157e   :  { %v792_v49 = vsel %vm1230_vm5, %v943_v48, %v1112_v46 }
0x157f   :  { %798 = vrot.lane.b32.xlu1 %v792_v49, %s1146_s2  ;;  %v796_v22 = vmul.f32 %v794_v50, %v792_v49 }
0x15f1   :  { %v799_v4 = vpop.permute.xlu1 %798 }
0x15f2   :  { %v801_v17 = vmul.f32 %v799_v4, %v792_v49 }
0x15f4   :  { %803 = vrot.lane.b32.xlu0 %v801_v17, %s1147_s28 }
0x15f8   :  { %187 = vrot.lane.b32.xlu0 %v1241_v39, %s1147_s28 }
0x15fc   :  { %365 = vrot.lane.b32.xlu0 %v1281_v33, %s1147_s28 }
0x1600   :  { %545 = vrot.lane.b32.xlu0 %v1321_v31, %s1147_s28  ;;  %v1065_v31 = vld [vmem:[%s1410_s4] sm:$0xff]  }
0x1601   :  { %1048 = vmatpush3.bf16.msra.mxu1 %v1065_v31 }
0x1602   :  { %1049 = vmatprep.subr.bf16.mxu1 %v1144_v3  ;;  %v944_v3 = vld [vmem:[%s1411_s5] ss:$0 sm:$0xff]  ;;  %s1148_s5 = smov [#allocation3]  }
0x1603   :  { %s907_s10 = sshll.u32 %s1148_s5, 4  ;;  %s908_s10 = int_to_ptr.vmem [resolvable:$true] %s907_s10 }
0x1604   :  { %725 = vrot.lane.b32.xlu0 %v723_v29, %s1147_s28  ;;  %s1119_s11 = scalar_lea.vmem %s908_s10, 128  ;;  %p1124_p1 = scmp.lt.s32.totalorder %s908_s10, %s908_s10 }
0x1605   :  { %1050 = vmatpush3.bf16.msra.mxu1 %v1066_v56  ;;  %p1120_p0 = scmp.ne.s32.totalorder %s908_s10, %s1119_s11  ;;  %p1125_p2 = scmp.lt.s32.totalorder %s1119_s11, %s1119_s11 }
0x1607   :  { %p1126_p3 = por %p1125_p2, %p1124_p1 }
0x1609   :  { %p1127_p4 = pnand %p1126_p3, %p1120_p0 }
0x1666   :  { %v804_v51 = vpop.permute.xlu0 %803 }
0x1667   :  { %v806_v52 = vadd.f32 %v804_v51, %v796_v22 }
0x1669   :  { %1113 = vtanh.f32 %v806_v52 }
0x166a   :  { %v188_v53 = vpop.permute.xlu0 %187 }
0x166b   :  { %191 = vst.msk [vmem:[#allocation2] sm:$0x1] %vm190_vm7, %v188_v53 }
0x166e   :  { %v366_v54 = vpop.permute.xlu0 %365 }
0x166f   :  { %369 = vst.msk [vmem:[#allocation2] sm:$0x4] %vm368_vm8, %v366_v54 }
0x1672   :  { %v546_v39 = vpop.permute.xlu0 %545 }
0x1673   :  { %v1114_v55 = vpop.eup %1113  ;;  %549 = vst.msk [vmem:[#allocation2] sm:$0x10] %vm548_vm9, %v546_v39 }
0x1674   :  { %809 = vrot.lane.b32.xlu1 %v1114_v55, %s1146_s2 }
0x1676   :  { %v726_v33 = vpop.permute.xlu0 %725 }
0x1677   :  { %729 = vst.msk [vmem:[#allocation2] sm:$0x40] %vm728_vm10, %v726_v33 }
0x1678   :  { %275 = vrot.lane.b32.xlu1 %v1261_v2, %s1147_s28 }
0x167c   :  { %454 = vrot.lane.b32.xlu1 %v1301_v61, %s1147_s28 }
0x1680   :  { %634 = vrot.lane.b32.xlu1 %v1340_v58, %s1147_s28 }
0x16e6   :  { %v810_v57 = vpop.permute.xlu1 %809 }
0x16e7   :  { %v812_v2 = vmul.f32 %v810_v57, %v792_v49 }
0x16e9   :  { %814 = vrot.lane.b32.xlu1 %v812_v2, %s1147_s28 }
0x16ea   :  { %v276_v61 = vpop.permute.xlu1 %275 }
0x16eb   :  { %279 = vst.msk [vmem:[#allocation2] sm:$0x2] %vm278_vm11, %v276_v61 }
0x16ee   :  { %v455_v58 = vpop.permute.xlu1 %454 }
0x16ef   :  { %458 = vst.msk [vmem:[#allocation2] sm:$0x8] %vm457_vm12, %v455_v58 }
0x16f2   :  { %v635_v59 = vpop.permute.xlu1 %634 }
0x16f3   :  { %638 = vst.msk [vmem:[#allocation2] sm:$0x20] %vm637_vm13, %v635_v59 }
0x175b   :  { %v815_v60 = vpop.permute.xlu1 %814 }
0x175c   :  { %818 = vst.msk [vmem:[#allocation2] sm:$0x80] %vm817_vm14, %v815_v60 }
0x1763   :  { %v819_v62 = vld [vmem:[#allocation2] sm:$0xff] }
0x1764   :  { %v820_v63 = vpack.c.bf16 %v819_v62, %v819_v62 }
0x1766   :  { %1052 = vmatmul.mubr.msk.bf16.vlgmr.msra.gmra.mrb[16].mxu1 %vm113_vm6, %v820_v63 }
0x1839   :  { %v881_v0 = vpop.f32.mrb[16].mxu1 }
0x183a   :  { %v882_v5 = vadd.f32 %v944_v3, %v881_v0  ;;  %v1053_v6 = vpop.f32.mrb[17].mxu1 }
0x183b   :  { %v884_v7 = vpop.f32.mrb[18].mxu1 }
0x183c   :  { %v1054_v8 = vpop.f32.mrb[19].mxu1  ;;  %v888_v9 = vsel %vm887_vm15, %v882_v5, -inf }
0x183d   :  { %889 = vmax.xlane.f32.xlu0 %v888_v9 }
0x18ca   :  { %v890_v10 = vpop.xlane.xlu0 %889 }
0x18cb   :  { %v891_v11 = vsub.f32 %v882_v5, %v890_v10 }
0x18cd   :  { %v892_v12 = vmul.f32 1.442695, %v891_v11 }
0x18cf   :  { %1115 = vpow2.f32 %v892_v12 }
0x18d9   :  { %v1116_v13 = vpop.eup %1115 }
0x18da   :  { %v894_v14 = vsel %vm887_vm15, %v1116_v13, 0.0 }
0x18db   :  { %895 = vadd.xlane.f32.xlu1 %v894_v14 }
0x1968   :  { %v896_v15 = vpop.xlane.xlu1 %895 }
0x1969   :  { %1117 = vlog2.f32 %v896_v15 }
0x1973   :  { %v1118_v16 = vpop.eup %1117 }
0x1974   :  { %v898_v18 = vmul.f32 0.6931472, %v1118_v16 }
0x1976   :  { %v899_v19 = vsub.f32 %v891_v11, %v898_v18 }
0x1978   :  { %900 = vst.msk [vmem:[#allocation3] sm:$0xff] %vm887_vm15, %v899_v19 }
0x1979   :  { %1130 = shalt.err (!%p1127_p4)
}
0x197a   :  { %s1131_s14 = scalar_lea.hbm %s1412_s6, 128 }
0x197b   :  { %p1132_p5 = scmp.ne.s32.totalorder %s1412_s6, %s1131_s14  ;;  %p1135_p6 = scmp.lt.u32.totalorder %s1131_s14, %s1412_s6 }
0x197d   :  { %p1137_p7 = pnand %p1135_p6, %p1132_p5 }
0x197f   :  { %1140 = shalt.err (!%p1137_p7)
}
0x1980   :  { %910 = dma.vmem_to_hbm [thread:$0]  %s908_s10, 128, %s1412_s6, [#allocation4]  }
0x1981   :  { %1141 = dma.done.wait [#allocation4], 128  }
0x1982   :  { %1142 = vsyncadd [#allocation4], 4294967168 }
0x1983   :  { %914 = vsyncpa [#allocation4], 1 }

</bundles_post_ra>
